<compile_context>
chip_gen: v7x
topology: tpu7x:2x2x1
jax: 0.10.0
libtpu: 0.0.40
codegen_flags: <defaults>
</compile_context>

<pallas_src>
import functools

import jax
import jax.numpy as jnp
from jax import lax
from jax.experimental import pallas as pl
from jax.experimental.pallas import tpu as pltpu


def _make_mlp_kernel(num_layers: int, compute_dtype):
    """Builds a kernel closure for a fixed number of hidden layers.

    Kernel operand layout:
      x_ref    : (block_b, d_in)            natural layout, compute_dtype cast in-kernel
      w0_ref   : (H, d_in)                  pre-cast to compute_dtype
      b_ref    : (num_layers + 1, H, 1)     f32 biases (input proj + hidden layers)
      wh_ref   : (num_layers, H, H)         pre-cast to compute_dtype (omitted if 0 layers)
      wout_ref : (H, 1)                     f32
      bout_ref : (1, 1)                     f32
      out_ref  : (1, block_b)               f32, lane-dense
    """

    def kernel(*refs):
        if num_layers > 0:
            x_ref, w0_ref, b_ref, wh_ref, wout_ref, bout_ref, out_ref = refs
        else:
            x_ref, w0_ref, b_ref, wout_ref, bout_ref, out_ref = refs
            wh_ref = None

        # Input projection + ReLU.  Contract W0 (H, d_in) with x (block_b, d_in)
        # on the last axis of both operands -> (H, block_b): batch lands on the
        # lane axis without any wrapper-side HBM transpose of x.
        xt = x_ref[...].astype(compute_dtype)
        h = lax.dot_general(
            w0_ref[...], xt,
            dimension_numbers=(((1,), (1,)), ((), ())),
            preferred_element_type=jnp.float32) + b_ref[0]
        h = jnp.maximum(h, 0.0)                       # (H, block_b), f32

        # Hidden layers (unrolled at trace time; num_layers is static).
        # Dropout is identity (p=0 / eval mode).
        for l in range(num_layers):
            h = jnp.dot(wh_ref[l], h.astype(compute_dtype),
                        preferred_element_type=jnp.float32) + b_ref[l + 1]
            h = jnp.maximum(h, 0.0)

        # Output head Linear(hidden, 1): VPU multiply + sublane reduction
        # instead of an N=1 MXU pass; result is already lane-dense (1, block_b).
        out_ref[...] = (jnp.sum(h * wout_ref[...], axis=0, keepdims=True)
                        + bout_ref[...])

    return kernel


def selective_net_forward(x, params, *, num_layers: int, block_b: int = 1024,
                          compute_dtype=jnp.float32):
    """Runs the MLP forward pass with a Pallas kernel.

    Args:
      x: (B, d_in) float32.  Any B; only the tail is padded to the batch tile
         and trimmed afterwards (no full-array transpose pass).
      params: PyTorch-native flat list
              [W0 (H, d_in), b0 (H,), (W_i (H, H), b_i (H,)) * num_layers,
               W_out (1, H), b_out (1,)].
      num_layers: number of hidden (hidden->hidden) layers.
      block_b: requested batch tile (lane-aligned, >=128).  The wrapper keeps
               >=2 grid blocks whenever the padded batch allows it (v7x
               megacore sharding of the "parallel" axis).
      compute_dtype: dtype of MXU matmul operands.  Keep f32 for small hidden
                     (<~128) and always on v5e; bf16 is only worthwhile for
                     large hidden on v6e/v7x.  Accumulation and all
                     elementwise work stay in f32.
    Returns:
      (B,) float32 — matches PyTorch's `.view(-1)`.
    """
    B, d_in = x.shape
    w0 = params[0]
    hidden = w0.shape[0]

    # --- pack / pre-cast parameters (done once in the wrapper, not per step) ---
    b0 = params[1].reshape(hidden, 1)
    hidden_ws = [params[2 + 2 * l] for l in range(num_layers)]
    hidden_bs = [params[3 + 2 * l].reshape(hidden, 1) for l in range(num_layers)]
    w_out = params[2 + 2 * num_layers].reshape(hidden, 1).astype(jnp.float32)
    b_out = params[3 + 2 * num_layers].reshape(1, 1).astype(jnp.float32)

    w0_c = w0.astype(compute_dtype)
    b_stack = jnp.stack([b0] + hidden_bs, axis=0).astype(jnp.float32)  # (L+1, H, 1)
    wh_c = (jnp.stack(hidden_ws, axis=0).astype(compute_dtype)
            if num_layers > 0 else None)                               # (L, H, H)

    # --- batch tiling: lane-aligned, >=128, and >=2 blocks when possible ---
    b_pad128 = 128 * pl.cdiv(B, 128)
    block_b = max(128, min(block_b, b_pad128))
    if pl.cdiv(b_pad128, block_b) < 2 and b_pad128 >= 256:
        # v7x has 2 TensorCores; a single grid block would leave one idle.
        block_b = max(128, 128 * ((b_pad128 // 2) // 128))
    num_blocks = pl.cdiv(b_pad128, block_b)
    b_pad = num_blocks * block_b

    x_in = x if b_pad == B else jnp.pad(x, ((0, b_pad - B), (0, 0)))

    kernel = _make_mlp_kernel(num_layers, compute_dtype)

    # Batch is tiled along the grid; the (small) packed weights are fully
    # resident in VMEM for every grid step (constant index_map).
    x_spec = pl.BlockSpec((block_b, d_in), lambda i: (i, 0))
    w0_spec = pl.BlockSpec((hidden, d_in), lambda i: (0, 0))
    b_spec = pl.BlockSpec((num_layers + 1, hidden, 1), lambda i: (0, 0, 0))
    wout_spec = pl.BlockSpec((hidden, 1), lambda i: (0, 0))
    bout_spec = pl.BlockSpec((1, 1), lambda i: (0, 0))
    out_spec = pl.BlockSpec((1, block_b), lambda i: (0, i))

    operands = [x_in, w0_c, b_stack]
    in_specs = [x_spec, w0_spec, b_spec]
    if num_layers > 0:
        operands.append(wh_c)
        in_specs.append(pl.BlockSpec((num_layers, hidden, hidden),
                                     lambda i: (0, 0, 0)))
    operands += [w_out, b_out]
    in_specs += [wout_spec, bout_spec]

    # Cost hint reflecting actual traffic (x counted once, weights in their
    # stored dtype).
    flops = 2 * b_pad * (d_in * hidden + num_layers * hidden * hidden + hidden)
    weight_bytes = (int(w0_c.size) * w0_c.dtype.itemsize
                    + int(b_stack.size) * 4
                    + (int(wh_c.size) * wh_c.dtype.itemsize if num_layers > 0 else 0)
                    + int(w_out.size) * 4 + int(b_out.size) * 4)
    bytes_accessed = int(b_pad) * d_in * 4 + weight_bytes + int(b_pad) * 4

    out = pl.pallas_call(
        kernel,
        out_shape=jax.ShapeDtypeStruct((1, b_pad), jnp.float32),
        grid_spec=pl.GridSpec(
            grid=(num_blocks,),
            in_specs=in_specs,
            out_specs=out_spec,
        ),
        compiler_params=pltpu.CompilerParams(
            dimension_semantics=("parallel",)),
        cost_estimate=pl.CostEstimate(
            flops=flops, transcendentals=0, bytes_accessed=bytes_accessed),
    )(*operands)

    return out.reshape(-1)[:B]


def init_params(key, input_dim, hidden_dim, num_layers):
    """Deterministic synthetic init, PyTorch-native shapes: W (out, in), b (out,)."""
    params = []
    dims = ([(hidden_dim, input_dim)]
            + [(hidden_dim, hidden_dim)] * num_layers
            + [(1, hidden_dim)])
    for (fan_out, fan_in) in dims:
        key, kw, kb = jax.random.split(key, 3)
        bound = 1.0 / (fan_in ** 0.5)
        params.append(jax.random.uniform(kw, (fan_out, fan_in), jnp.float32,
                                         minval=-bound, maxval=bound))
        params.append(jax.random.uniform(kb, (fan_out,), jnp.float32,
                                         minval=-bound, maxval=bound))
    return params


def reference_forward(x, params, num_layers, compute_dtype=jnp.float32):
    """Pure-JAX reference with the same cast/accumulation semantics."""
    def lin(h, w, b):  # w: (out, in), b: (out,)
        return (jnp.dot(h.astype(compute_dtype), w.T.astype(compute_dtype),
                        preferred_element_type=jnp.float32) + b.reshape(1, -1))

    h = jnp.maximum(lin(x, params[0], params[1]), 0.0)
    idx = 2
    for _ in range(num_layers):
        h = jnp.maximum(lin(h, params[idx], params[idx + 1]), 0.0)
        idx += 2
    w_out = params[idx]          # (1, hidden)
    b_out = params[idx + 1]      # (1,)
    return (jnp.dot(h, w_out.reshape(-1, 1), preferred_element_type=jnp.float32)
            + b_out.reshape(1, 1)).reshape(-1)


if __name__ == "__main__":
    # Small shapes consistent with the module: batch=8, input_dim=16,
    # hidden_dim=32, num_layers=2, dropout=0.0 (eval mode => identity).
    B, INPUT_DIM, HIDDEN_DIM, NUM_LAYERS = 8, 16, 32, 2

    key = jax.random.PRNGKey(0)
    key, kx = jax.random.split(key)
    x = jax.random.normal(kx, (B, INPUT_DIM), jnp.float32)
    params = init_params(key, INPUT_DIM, HIDDEN_DIM, NUM_LAYERS)

    # f32 path (exact against the f32 reference).
    fwd_f32 = jax.jit(functools.partial(selective_net_forward,
                                        num_layers=NUM_LAYERS))
    out_f32 = jax.block_until_ready(fwd_f32(x, params))
    ref_f32 = reference_forward(x, params, NUM_LAYERS)
    assert out_f32.shape == (B,)
    assert jnp.allclose(out_f32, ref_f32, atol=1e-5, rtol=1e-5)

    # Larger, non-tile-multiple batch: exercises tail padding and the
    # >=2-grid-block split (v7x megacore path).
    B2 = 300
    key, kx2 = jax.random.split(key)
    x2 = jax.random.normal(kx2, (B2, INPUT_DIM), jnp.float32)
    out2 = jax.block_until_ready(fwd_f32(x2, params))
    ref2 = reference_forward(x2, params, NUM_LAYERS)
    assert out2.shape == (B2,)
    assert jnp.allclose(out2, ref2, atol=1e-5, rtol=1e-5)

    # Optional bf16-operand MXU path (only worthwhile for large hidden on
    # v6e/v7x; kept here as a correctness check against a matching-cast ref).
    fwd_bf16 = jax.jit(functools.partial(selective_net_forward,
                                         num_layers=NUM_LAYERS,
                                         compute_dtype=jnp.bfloat16))
    out_bf16 = jax.block_until_ready(fwd_bf16(x, params))
    ref_bf16 = reference_forward(x, params, NUM_LAYERS,
                                 compute_dtype=jnp.bfloat16)
    assert out_bf16.shape == (B,)
    assert jnp.allclose(out_bf16, ref_bf16, atol=5e-3, rtol=5e-3)

    print("KERNEL_OK")
</pallas_src>

<mosaic_0001>
module attributes {stable_mosaic.version = 11 : i64} {
  func.func @kernel(%arg0: i32, %arg1: memref<128x16xf32, #tpu.memory_space<vmem>>, %arg2: memref<32x16xf32, #tpu.memory_space<vmem>>, %arg3: memref<3x32x1xf32, #tpu.memory_space<vmem>>, %arg4: memref<2x32x32xf32, #tpu.memory_space<vmem>>, %arg5: memref<32x1xf32, #tpu.memory_space<vmem>>, %arg6: memref<1x1xf32, #tpu.memory_space<vmem>>, %arg7: memref<1x128xf32, #tpu.memory_space<vmem>>) attributes {dimension_semantics = [#tpu.dimension_semantics<parallel>], iteration_bounds = array<i64: 1>, scalar_prefetch = 0 : i64, scratch_operands = 0 : i64, tpu.core_type = #tpu.core_type<tc>, window_params = [{transform_indices = @transform_0, window_bounds = array<i64: 128, 16>}, {pipeline_mode = #tpu.pipeline_mode<synchronous>, transform_indices = @transform_1, window_bounds = array<i64: 32, 16>}, {pipeline_mode = #tpu.pipeline_mode<synchronous>, transform_indices = @transform_2, window_bounds = array<i64: 3, 32, 1>}, {pipeline_mode = #tpu.pipeline_mode<synchronous>, transform_indices = @transform_3, window_bounds = array<i64: 2, 32, 32>}, {pipeline_mode = #tpu.pipeline_mode<synchronous>, transform_indices = @transform_4, window_bounds = array<i64: 32, 1>}, {pipeline_mode = #tpu.pipeline_mode<synchronous>, transform_indices = @transform_5, window_bounds = array<i64: 1, 1>}, {transform_indices = @transform_6, window_bounds = array<i64: 1, 128>}]} {
    %c0 = arith.constant 0 : index
    %c0_0 = arith.constant 0 : index
    %0 = vector.load %arg1[%c0, %c0_0] : memref<128x16xf32, #tpu.memory_space<vmem>>, vector<128x16xf32>
    %c0_1 = arith.constant 0 : index
    %c0_2 = arith.constant 0 : index
    %1 = vector.load %arg2[%c0_1, %c0_2] : memref<32x16xf32, #tpu.memory_space<vmem>>, vector<32x16xf32>
    %cst = arith.constant dense<0.000000e+00> : vector<32x128xf32>
    %2 = tpu.matmul %1, %0, %cst {dimension_numbers = #tpu.dot_dimension_numbers<[1], [1], [0], [0], [0, 0, 1, 0], [], []>} : vector<32x16xf32>, vector<128x16xf32>, vector<32x128xf32> -> vector<32x128xf32>
    %c0_3 = arith.constant 0 : index
    %c0_4 = arith.constant 0 : index
    %c0_5 = arith.constant 0 : index
    %3 = vector.load %arg3[%c0_3, %c0_4, %c0_5] : memref<3x32x1xf32, #tpu.memory_space<vmem>>, vector<1x32x1xf32>
    %4 = vector.shape_cast %3 : vector<1x32x1xf32> to vector<32x1xf32>
    %5 = vector.broadcast %4 : vector<32x1xf32> to vector<32x128xf32>
    %6 = arith.addf %2, %5 : vector<32x128xf32>
    %cst_6 = arith.constant 0.000000e+00 : f32
    %7 = vector.broadcast %cst_6 : f32 to vector<32x128xf32>
    %8 = arith.maximumf %6, %7 : vector<32x128xf32>
    %c0_7 = arith.constant 0 : index
    %c0_8 = arith.constant 0 : index
    %c0_9 = arith.constant 0 : index
    %9 = vector.load %arg4[%c0_7, %c0_8, %c0_9] : memref<2x32x32xf32, #tpu.memory_space<vmem>>, vector<1x32x32xf32>
    %10 = vector.shape_cast %9 : vector<1x32x32xf32> to vector<32x32xf32>
    %cst_10 = arith.constant dense<0.000000e+00> : vector<32x128xf32>
    %11 = tpu.matmul %10, %8, %cst_10 {dimension_numbers = #tpu.dot_dimension_numbers<[1], [0], [0], [1], [0, 0, 1, 1], [], []>} : vector<32x32xf32>, vector<32x128xf32>, vector<32x128xf32> -> vector<32x128xf32>
    %c1 = arith.constant 1 : index
    %c0_11 = arith.constant 0 : index
    %c0_12 = arith.constant 0 : index
    %12 = vector.load %arg3[%c1, %c0_11, %c0_12] : memref<3x32x1xf32, #tpu.memory_space<vmem>>, vector<1x32x1xf32>
    %13 = vector.shape_cast %12 : vector<1x32x1xf32> to vector<32x1xf32>
    %14 = vector.broadcast %13 : vector<32x1xf32> to vector<32x128xf32>
    %15 = arith.addf %11, %14 : vector<32x128xf32>
    %cst_13 = arith.constant 0.000000e+00 : f32
    %16 = vector.broadcast %cst_13 : f32 to vector<32x128xf32>
    %17 = arith.maximumf %15, %16 : vector<32x128xf32>
    %c1_14 = arith.constant 1 : index
    %c0_15 = arith.constant 0 : index
    %c0_16 = arith.constant 0 : index
    %18 = vector.load %arg4[%c1_14, %c0_15, %c0_16] : memref<2x32x32xf32, #tpu.memory_space<vmem>>, vector<1x32x32xf32>
    %19 = vector.shape_cast %18 : vector<1x32x32xf32> to vector<32x32xf32>
    %cst_17 = arith.constant dense<0.000000e+00> : vector<32x128xf32>
    %20 = tpu.matmul %19, %17, %cst_17 {dimension_numbers = #tpu.dot_dimension_numbers<[1], [0], [0], [1], [0, 0, 1, 1], [], []>} : vector<32x32xf32>, vector<32x128xf32>, vector<32x128xf32> -> vector<32x128xf32>
    %c2 = arith.constant 2 : index
    %c0_18 = arith.constant 0 : index
    %c0_19 = arith.constant 0 : index
    %21 = vector.load %arg3[%c2, %c0_18, %c0_19] : memref<3x32x1xf32, #tpu.memory_space<vmem>>, vector<1x32x1xf32>
    %22 = vector.shape_cast %21 : vector<1x32x1xf32> to vector<32x1xf32>
    %23 = vector.broadcast %22 : vector<32x1xf32> to vector<32x128xf32>
    %24 = arith.addf %20, %23 : vector<32x128xf32>
    %cst_20 = arith.constant 0.000000e+00 : f32
    %25 = vector.broadcast %cst_20 : f32 to vector<32x128xf32>
    %26 = arith.maximumf %24, %25 : vector<32x128xf32>
    %c0_21 = arith.constant 0 : index
    %c0_22 = arith.constant 0 : index
    %27 = vector.load %arg5[%c0_21, %c0_22] : memref<32x1xf32, #tpu.memory_space<vmem>>, vector<32x1xf32>
    %28 = vector.broadcast %27 : vector<32x1xf32> to vector<32x128xf32>
    %29 = arith.mulf %26, %28 : vector<32x128xf32>
    %cst_23 = arith.constant dense<0.000000e+00> : vector<128xf32>
    %30 = vector.multi_reduction <add>, %29, %cst_23 [0] : vector<32x128xf32> to vector<128xf32>
    %31 = vector.shape_cast %30 : vector<128xf32> to vector<1x128xf32>
    %c0_24 = arith.constant 0 : index
    %c0_25 = arith.constant 0 : index
    %32 = vector.load %arg6[%c0_24, %c0_25] : memref<1x1xf32, #tpu.memory_space<vmem>>, vector<1x1xf32>
    %33 = vector.broadcast %32 : vector<1x1xf32> to vector<1x128xf32>
    %34 = arith.addf %31, %33 : vector<1x128xf32>
    %c0_26 = arith.constant 0 : index
    %c0_27 = arith.constant 0 : index
    %35 = vector.load %arg7[%c0_26, %c0_27] : memref<1x128xf32, #tpu.memory_space<vmem>>, vector<1x128xf32>
    tpu.vector_store %arg7[%c0_26, %c0_27], %34 {strides = array<i32>} : memref<1x128xf32, #tpu.memory_space<vmem>>, vector<1x128xf32>,
    return
  }
  func.func @transform_0(%arg0: i32) -> (i32, i32) {
    %c0_i32 = arith.constant 0 : i32
    %c0_i32_0 = arith.constant 0 : i32
    return %arg0, %c0_i32 : i32, i32
  }
  func.func @transform_1(%arg0: i32) -> (i32, i32) {
    %c0_i32 = arith.constant 0 : i32
    %c0_i32_0 = arith.constant 0 : i32
    %c0_i32_1 = arith.constant 0 : i32
    return %c0_i32, %c0_i32_0 : i32, i32
  }
  func.func @transform_2(%arg0: i32) -> (i32, i32, i32) {
    %c0_i32 = arith.constant 0 : i32
    %c0_i32_0 = arith.constant 0 : i32
    %c0_i32_1 = arith.constant 0 : i32
    %c0_i32_2 = arith.constant 0 : i32
    return %c0_i32, %c0_i32_0, %c0_i32_1 : i32, i32, i32
  }
  func.func @transform_3(%arg0: i32) -> (i32, i32, i32) {
    %c0_i32 = arith.constant 0 : i32
    %c0_i32_0 = arith.constant 0 : i32
    %c0_i32_1 = arith.constant 0 : i32
    %c0_i32_2 = arith.constant 0 : i32
    return %c0_i32, %c0_i32_0, %c0_i32_1 : i32, i32, i32
  }
  func.func @transform_4(%arg0: i32) -> (i32, i32) {
    %c0_i32 = arith.constant 0 : i32
    %c0_i32_0 = arith.constant 0 : i32
    %c0_i32_1 = arith.constant 0 : i32
    return %c0_i32, %c0_i32_0 : i32, i32
  }
  func.func @transform_5(%arg0: i32) -> (i32, i32) {
    %c0_i32 = arith.constant 0 : i32
    %c0_i32_0 = arith.constant 0 : i32
    %c0_i32_1 = arith.constant 0 : i32
    return %c0_i32, %c0_i32_0 : i32, i32
  }
  func.func @transform_6(%arg0: i32) -> (i32, i32) {
    %c0_i32 = arith.constant 0 : i32
    %c0_i32_0 = arith.constant 0 : i32
    return %c0_i32, %arg0 : i32, i32
  }
}

</mosaic_0001>

<bundles_post_ra>
// kernel: selective_net_forward.1
= control target key start
LH: loop header
LB: loop body
LE: loop exit
PB: predicated region body
PF: predicated region fallthrough
CT: control target
= control target key end

     0   :  { %vm69_vm0 = vcmask 130048   ;;  %v743_v3 = vmov 0   ;;  %vm248_vm2 = vcmask 261120   ;;  %s967_s0 = inlined_call_operand.vmem [shape: f32[128,16], index: 0, kind: input, shape index: {}]   ;;  %s968_s5 = inlined_call_operand.<no memory space> [shape: f32[1,1], index: 5, kind: input, shape index: {}]   ;;  %s969_s1 = inlined_call_operand.vmem [shape: f32[32,16], index: 1, kind: input, shape index: {}]   ;;  %s970_s2 = inlined_call_operand.vmem [shape: f32[3,32,1], index: 2, kind: input, shape index: {}]   ;;  %s971_s4 = inlined_call_operand.vmem [shape: f32[32,1], index: 4, kind: input, shape index: {}]   ;;  %s972_s3 = inlined_call_operand.vmem [shape: f32[2,32,32], index: 3, kind: input, shape index: {}]   ;;  %s973_s6 = inlined_call_operand.vmem [shape: f32[1,128], index: 6, kind: output, shape index: {}]  }
   0x1   :  { %v25_v0 = vld [vmem:[%s967_s0] sm:$0xff]  ;;  %v26_v1 = vld [vmem:[%s967_s0 + $0x8] sm:$0xff]  ;;  %vm787_vm1 = vmpackc.low %vm69_vm0, %vm69_vm0  ;;  %741 = vset.pattern.permute.xlu0 %v743_v3  ;;  %742 = vset.pattern.permute.xlu1 %v743_v3  ;;  %v11_v4 = vstv %s968_s5 }
   0x2   :  { %v676_v5 = vpack.c.bf16 %v26_v1, %v25_v0  ;;  %v27_v6 = vld [vmem:[%s967_s0 + $0x10] sm:$0xff]  ;;  %v28_v7 = vld [vmem:[%s967_s0 + $0x18] sm:$0xff]  ;;  %12 = vst [vmem:[#allocation2] sm:$0x1] %v11_v4  ;;  %v41_v9 = vld [vmem:[%s969_s1] sm:$0xff] }
   0x3   :  { %v682_v8 = vpack.c.bf16 %v28_v7, %v27_v6  ;;  %v29_v10 = vld [vmem:[%s967_s0 + $0x20] sm:$0xff]  ;;  %v30_v11 = vld [vmem:[%s967_s0 + $0x28] sm:$0xff]  ;;  %642 = vmatprep.mubr.msk.f32.mxu0 %vm69_vm0, %v41_v9  ;;  %v47_v13 = vld [vmem:[%s970_s2 + $0x10] sm:$0xff] }
   0x4   :  { %678 = vmatprep.subr.msk.bf16.mxu0 %vm787_vm1, %v676_v5  ;;  %v45_v12 = vld [vmem:[%s970_s2] sm:$0xff]  ;;  %61 = vperm.xlu1 %742, %v47_v13   ;;  %v688_v14 = vpack.c.bf16 %v30_v11, %v29_v10  ;;  %v46_v15 = vld [vmem:[%s970_s2 + $0x8] sm:$0xff]  ;;  %v48_v16 = vld [vmem:[%s970_s2 + $0x18] sm:$0xff] }
   0x5   :  { %681 = vmatpush3.bf16.xpose.msk.msra.mxu0 %vm787_vm1, %v676_v5  ;;  %51 = vperm.xlu0 %741, %v45_v12   ;;  %v554_v17 = vld [vmem:[%s970_s2 + $0x20] sm:$0xff]  ;;  %v31_v18 = vld [vmem:[%s967_s0 + $0x30] sm:$0xff]  ;;  %v32_v19 = vld [vmem:[%s967_s0 + $0x38] sm:$0xff] }
   0x6   :  { %684 = vmatprep.subr.msk.bf16.mxu0 %vm787_vm1, %v682_v8  ;;  %v555_v20 = vld [vmem:[%s970_s2 + $0x28] sm:$0xff]  ;;  %v694_v21 = vpack.c.bf16 %v32_v19, %v31_v18  ;;  %v556_v22 = vld [vmem:[%s970_s2 + $0x30] sm:$0xff]  ;;  %v557_v23 = vld [vmem:[%s970_s2 + $0x38] sm:$0xff] }
   0x7   :  { %v566_v24 = vld [vmem:[%s970_s2 + $0x40] sm:$0xff]  ;;  %v34_v26 = vld [vmem:[%s967_s0 + $0x48] sm:$0xff]  ;;  %v568_v29 = vld [vmem:[%s970_s2 + $0x50] sm:$0xff] }
   0x8   :  { %66 = vperm.xlu1 %742, %v48_v16   ;;  %v33_v25 = vld [vmem:[%s967_s0 + $0x40] sm:$0xff]  ;;  %v567_v27 = vld [vmem:[%s970_s2 + $0x48] sm:$0xff]  ;;  %v569_v30 = vld [vmem:[%s970_s2 + $0x58] sm:$0xff] }
   0x9   :  { %56 = vperm.xlu0 %741, %v46_v15   ;;  %v700_v28 = vpack.c.bf16 %v34_v26, %v33_v25  ;;  %v481_v31 = vld [vmem:[%s971_s4] sm:$0xff]  ;;  %v35_v32 = vld [vmem:[%s967_s0 + $0x50] sm:$0xff]  ;;  %v36_v33 = vld [vmem:[%s967_s0 + $0x58] sm:$0xff] }
   0xa   :  { %v482_v34 = vld [vmem:[%s971_s4 + $0x8] sm:$0xff]  ;;  %v706_v35 = vpack.c.bf16 %v36_v33, %v35_v32  ;;  %v483_v36 = vld [vmem:[%s971_s4 + $0x10] sm:$0xff]  ;;  %v484_v37 = vld [vmem:[%s971_s4 + $0x18] sm:$0xff] }
   0xb   :  { %v518_v38 = vld [vmem:[#allocation2] sm:$0x1]  ;;  %v38_v40 = vld [vmem:[%s967_s0 + $0x68] sm:$0xff]  ;;  %v39_v42 = vld [vmem:[%s967_s0 + $0x70] sm:$0xff] }
   0xc   :  { %235 = vperm.xlu1 %742, %v555_v20   ;;  %v37_v39 = vld [vmem:[%s967_s0 + $0x60] sm:$0xff]  ;;  %v40_v43 = vld [vmem:[%s967_s0 + $0x78] sm:$0xff]  ;;  %v42_v45 = vld [vmem:[%s969_s1 + $0x8] sm:$0xff] }
   0xd   :  { %687 = vmatpush3.bf16.xpose.msk.msra.mxu0 %vm787_vm1, %v682_v8  ;;  %230 = vperm.xlu0 %741, %v554_v17   ;;  %v712_v41 = vpack.c.bf16 %v38_v40, %v37_v39  ;;  %v718_v44 = vpack.c.bf16 %v40_v43, %v39_v42  ;;  %v43_v46 = vld [vmem:[%s969_s1 + $0x10] sm:$0xff]  ;;  %v44_v47 = vld [vmem:[%s969_s1 + $0x18] sm:$0xff]  ;;  %v219_v48 = vld [vmem:[%s972_s3] sm:$0xff] }
   0xe   :  { %690 = vmatprep.subr.msk.bf16.mxu0 %vm787_vm1, %v688_v14  ;;  %656 = vmatprep.mubr.msk.f32.mxu1 %vm248_vm2, %v219_v48  ;;  %v220_v3 = vld [vmem:[%s972_s3 + $0x8] sm:$0xff]  ;;  %v221_v4 = vld [vmem:[%s972_s3 + $0x10] sm:$0xff]  ;;  %v222_v5 = vld [vmem:[%s972_s3 + $0x18] sm:$0xff] }
   0xf   :  { %v562_v6 = vld [vmem:[%s972_s3 + $0x20] sm:$0xff]  ;;  %v563_v25 = vld [vmem:[%s972_s3 + $0x28] sm:$0xff]  ;;  %v564_v26 = vld [vmem:[%s972_s3 + $0x30] sm:$0xff] }
  0x10   :  { %245 = vperm.xlu1 %742, %v557_v23  }
  0x11   :  { %240 = vperm.xlu0 %741, %v556_v22  }
  0x14   :  { %367 = vperm.xlu1 %742, %v567_v27   ;;  %v565_v27 = vld [vmem:[%s972_s3 + $0x38] sm:$0xff] }
  0x15   :  { %693 = vmatpush3.bf16.xpose.msk.msra.mxu0 %vm787_vm1, %v688_v14  ;;  %362 = vperm.xlu0 %741, %v566_v24  }
  0x16   :  { %696 = vmatprep.subr.msk.bf16.mxu0 %vm787_vm1, %v694_v21 }
  0x18   :  { %377 = vperm.xlu1 %742, %v569_v30  }
  0x19   :  { %372 = vperm.xlu0 %741, %v568_v29  }
  0x1c   :  { %492 = vperm.xlu1 %742, %v482_v34  }
  0x1d   :  { %699 = vmatpush3.bf16.xpose.msk.msra.mxu0 %vm787_vm1, %v694_v21  ;;  %487 = vperm.xlu0 %741, %v481_v31  }
  0x1e   :  { %702 = vmatprep.subr.msk.bf16.mxu0 %vm787_vm1, %v700_v28 }
  0x20   :  { %502 = vperm.xlu1 %742, %v484_v37  }
  0x21   :  { %497 = vperm.xlu0 %741, %v483_v36  }
  0x25   :  { %705 = vmatpush3.bf16.xpose.msk.msra.mxu0 %vm787_vm1, %v700_v28  ;;  %521 = vperm.xlu0 %741, %v518_v38  }
  0x26   :  { %708 = vmatprep.subr.msk.bf16.mxu0 %vm787_vm1, %v706_v35 }
  0x2d   :  { %711 = vmatpush3.bf16.xpose.msk.msra.mxu0 %vm787_vm1, %v706_v35 }
  0x2e   :  { %714 = vmatprep.subr.msk.bf16.mxu0 %vm787_vm1, %v712_v41 }
  0x35   :  { %717 = vmatpush3.bf16.xpose.msk.msra.mxu0 %vm787_vm1, %v712_v41 }
  0x36   :  { %720 = vmatprep.subr.msk.bf16.mxu0 %vm787_vm1, %v718_v44 }
  0x3d   :  { %723 = vmatpush3.bf16.xpose.msk.msra.mxu0 %vm787_vm1, %v718_v44 }
  0x44   :  { %643 = vmatmul.mubr.msk.f32.vlgmr.msra.gmra.mrb[0].mxu0 %vm69_vm0, %v42_v45 }
  0x45   :  { %645 = vmatprep.mubr.msk.f32.mxu0 %vm69_vm0, %v43_v46 }
  0x48   :  { %646 = vmatmul.mubr.msk.f32.gmra.mrb[2].mxu0 %vm69_vm0, %v44_v47 }
  0x83   :  { %v62_v50 = vpop.permute.xlu1 %61 }
  0x84   :  { %v52_v49 = vpop.permute.xlu0 %51 }
  0x87   :  { %v67_v57 = vpop.permute.xlu1 %66 }
  0x88   :  { %v57_v51 = vpop.permute.xlu0 %56 }
  0x8b   :  { %v236_v7 = vpop.permute.xlu1 %235 }
  0x8c   :  { %v231_v8 = vpop.permute.xlu0 %230 }
  0x8f   :  { %v246_v14 = vpop.permute.xlu1 %245 }
  0x90   :  { %v241_v17 = vpop.permute.xlu0 %240 }
  0x93   :  { %v368_v29 = vpop.permute.xlu1 %367 }
  0x94   :  { %v363_v28 = vpop.permute.xlu0 %362 }
  0x97   :  { %v378_v31 = vpop.permute.xlu1 %377 }
  0x98   :  { %v373_v30 = vpop.permute.xlu0 %372 }
  0x9b   :  { %v493_v38 = vpop.permute.xlu1 %492 }
  0x9c   :  { %v488_v36 = vpop.permute.xlu0 %487 }
 0x117   :  { %v644_v52 = vpop.f32.mrb[0].mxu0 }
 0x118   :  { %v202_v53 = vadd.f32 %v644_v52, %v57_v51  ;;  %v196_v54 = vpop.f32.mrb[1].mxu0  ;;  %v503_v51 = vpop.permute.xlu1 %502 }
 0x119   :  { %v197_v55 = vadd.f32 %v196_v54, %v52_v49  ;;  %v498_v49 = vpop.permute.xlu0 %497  ;;  %v524_v54 = vlaneseq }
 0x11a   :  { %v216_v56 = vmax.f32 %v202_v53, 0.0 }
 0x11b   :  { %v215_v58 = vmax.f32 %v197_v55, 0.0  ;;  %v647_v59 = vpop.f32.mrb[2].mxu0 }
 0x11c   :  { %v212_v60 = vadd.f32 %v647_v59, %v67_v57  ;;  %v206_v61 = vpop.f32.mrb[3].mxu0  ;;  %v525_v57 = vshrl.u32 %v524_v54, 7 }
 0x11d   :  { %v207_v62 = vadd.f32 %v206_v61, %v62_v50  ;;  %v724_v63 = vpack.c.bf16 %v216_v56, %v215_v58 }
 0x11e   :  { %v218_v0 = vmax.f32 %v212_v60, 0.0  ;;  %v526_v60 = vsub.s32 0, %v525_v57 }
 0x11f   :  { %v217_v1 = vmax.f32 %v207_v62, 0.0  ;;  %725 = vmatprep.subr.bf16.mxu1 %v724_v63  ;;  %v522_v62 = vpop.permute.xlu0 %521 }
 0x120   :  { %727 = vmatpush3.bf16.msra.mxu1 %v724_v63 }
 0x121   :  { %v728_v2 = vpack.c.bf16 %v218_v0, %v217_v1  ;;  %v527_v0 = vrot.slane %v522_v62, %v526_v60 }
 0x123   :  { %729 = vmatprep.subr.bf16.mxu1 %v728_v2 }
 0x124   :  { %731 = vmatpush3.bf16.msra.mxu1 %v728_v2 }
 0x127   :  { %657 = vmatmul.mubr.msk.f32.vlgmr.msra.gmra.mrb[0].mxu1 %vm248_vm2, %v220_v3 }
 0x128   :  { %659 = vmatprep.mubr.msk.f32.mxu1 %vm248_vm2, %v221_v4 }
 0x12b   :  { %660 = vmatmul.mubr.msk.f32.gmra.mrb[2].mxu1 %vm248_vm2, %v222_v5 }
 0x12c   :  { %670 = vmatprep.mubr.msk.f32.mxu1 %vm248_vm2, %v562_v6 }
 0x1fa   :  { %v658_v9 = vpop.f32.mrb[0].mxu1 }
 0x1fb   :  { %v333_v10 = vadd.f32 %v658_v9, %v236_v7  ;;  %v327_v11 = vpop.f32.mrb[1].mxu1 }
 0x1fc   :  { %v328_v12 = vadd.f32 %v327_v11, %v231_v8 }
 0x1fd   :  { %v347_v13 = vmax.f32 %v333_v10, 0.0 }
 0x1fe   :  { %v346_v15 = vmax.f32 %v328_v12, 0.0  ;;  %v661_v16 = vpop.f32.mrb[2].mxu1 }
 0x1ff   :  { %v343_v18 = vadd.f32 %v661_v16, %v246_v14  ;;  %v337_v19 = vpop.f32.mrb[3].mxu1 }
 0x200   :  { %v732_v20 = vpack.c.bf16 %v347_v13, %v346_v15  ;;  %v338_v21 = vadd.f32 %v337_v19, %v241_v17 }
 0x201   :  { %v349_v22 = vmax.f32 %v343_v18, 0.0 }
 0x202   :  { %v348_v23 = vmax.f32 %v338_v21, 0.0  ;;  %733 = vmatprep.subr.bf16.mxu1 %v732_v20 }
 0x203   :  { %735 = vmatpush3.bf16.msra.mxu1 %v732_v20 }
 0x204   :  { %v736_v24 = vpack.c.bf16 %v349_v22, %v348_v23 }
 0x206   :  { %737 = vmatprep.subr.bf16.mxu1 %v736_v24 }
 0x207   :  { %739 = vmatpush3.bf16.msra.mxu1 %v736_v24 }
 0x20a   :  { %671 = vmatmul.mubr.msk.f32.vlgmr.msra.gmra.mrb[4].mxu1 %vm248_vm2, %v563_v25 }
 0x20b   :  { %673 = vmatprep.mubr.msk.f32.mxu1 %vm248_vm2, %v564_v26 }
 0x20e   :  { %674 = vmatmul.mubr.msk.f32.gmra.mrb[6].mxu1 %vm248_vm2, %v565_v27 }
 0x2dd   :  { %v672_v32 = vpop.f32.mrb[4].mxu1 }
 0x2de   :  { %v464_v33 = vadd.f32 %v672_v32, %v368_v29  ;;  %v458_v34 = vpop.f32.mrb[5].mxu1 }
 0x2df   :  { %v459_v35 = vadd.f32 %v458_v34, %v363_v28 }
 0x2e0   :  { %v478_v37 = vmax.f32 %v464_v33, 0.0 }
 0x2e1   :  { %v477_v39 = vmax.f32 %v459_v35, 0.0  ;;  %v675_v40 = vpop.f32.mrb[6].mxu1 }
 0x2e2   :  { %v506_v41 = vmul.f32 %v493_v38, %v478_v37  ;;  %v474_v42 = vadd.f32 %v675_v40, %v378_v31  ;;  %v468_v43 = vpop.f32.mrb[7].mxu1 }
 0x2e3   :  { %v505_v44 = vmul.f32 %v488_v36, %v477_v39  ;;  %v469_v45 = vadd.f32 %v468_v43, %v373_v30 }
 0x2e4   :  { %v480_v47 = vmax.f32 %v474_v42, 0.0 }
 0x2e5   :  { %v509_v46 = vadd.f32 %v506_v41, %v505_v44  ;;  %v479_v48 = vmax.f32 %v469_v45, 0.0 }
 0x2e6   :  { %v508_v52 = vmul.f32 %v503_v51, %v480_v47 }
 0x2e7   :  { %v507_v50 = vmul.f32 %v498_v49, %v479_v48 }
 0x2e9   :  { %v510_v53 = vadd.f32 %v509_v46, %v507_v50 }
 0x2eb   :  { %v511_v55 = vadd.f32 %v510_v53, %v508_v52 }
 0x2ed   :  { %v512_v56 = vrot.slane %v511_v55, 4 }
 0x2ef   :  { %v513_v58 = vadd.f32 %v512_v56, %v511_v55 }
 0x2f1   :  { %v514_v59 = vrot.slane %v513_v58, 2 }
 0x2f3   :  { %v515_v61 = vadd.f32 %v514_v59, %v513_v58 }
 0x2f5   :  { %v516_v63 = vrot.slane %v515_v61, 1 }
 0x2f7   :  { %v517_v1 = vadd.f32 %v516_v63, %v515_v61 }
 0x2f9   :  { %v528_v2 = vadd.f32 %v527_v0, %v517_v1 }
 0x2fb   :  { %529 = vst [vmem:[%s973_s6] sm:$0x1] %v528_v2 }

</bundles_post_ra>
